<compile_context>
chip_gen: v6e
topology: v6e:2x2x1
jax: 0.10.0
libtpu: 0.0.40
codegen_flags: <defaults>
</compile_context>

<pallas_src>
import functools

import jax
import jax.numpy as jnp
from jax.experimental import pallas as pl
from jax.experimental.pallas import tpu as pltpu


def _round_up(x, m):
    return ((x + m - 1) // m) * m


def _choose_tile_b(B):
    """Rows per grid step: big enough to amortize per-step overhead (~0.35us),
    capped at 1024, and split into >=2 steps when possible (v7x megacore)."""
    b8 = _round_up(max(B, 1), 8)
    if b8 <= 8:
        return b8
    return min(1024, _round_up(pl.cdiv(b8, 2), 8))


def _make_mlp_kernel(n_hidden):
    """Kernel for `n_hidden` MXU Linear layers (layer 0: no activation,
    layers 1..: relu) followed by the single-unit sigmoid output layer,
    packed lane-dense as a (1, tile_b) row.  Dropout == identity (eval)."""

    def kernel(x_ref, *refs):
        wb = refs[: 2 * n_hidden]
        w_last_ref = refs[2 * n_hidden]      # (1, n_units)  f32
        b_last_ref = refs[2 * n_hidden + 1]  # (1, 1)        f32
        o_ref = refs[-1]                     # (1, tile_b)   f32

        compute_dtype = wb[0].dtype          # MXU operand dtype (f32 or bf16)

        h = x_ref[...]                       # (tile_b, feat_in) f32
        for i in range(n_hidden):
            w_ref = wb[2 * i]
            b_ref = wb[2 * i + 1]
            # MXU matmul in compute_dtype, f32 accumulation, f32 epilogue.
            h = (
                jnp.dot(
                    h.astype(compute_dtype),
                    w_ref[...],
                    preferred_element_type=jnp.float32,
                )
                + b_ref[...]
            )
            if i > 0:
                h = jnp.maximum(h, 0.0)
            # dropout == identity in eval mode

        # Final single-unit layer: (1, n_units) . (tile_b, n_units)^T -> (1, tile_b)
        # (contraction on the last dim of both operands; kept in f32 -- tiny flops).
        z = jax.lax.dot_general(
            w_last_ref[...],
            h,
            dimension_numbers=(((1,), (1,)), ((), ())),
            preferred_element_type=jnp.float32,
        )
        o_ref[...] = jax.nn.sigmoid(z + b_last_ref[...])

    return kernel


def prepare_params(params, compute_dtype=jnp.float32):
    """One-time weight preparation (call OUTSIDE the per-forward path).

    params: tuple of (w, b) per layer with w shaped [in, out], b shaped [1, out];
    the last layer has out == 1.  Returns (hidden, (w_last_row, b_last)) with
    hidden weights cast to `compute_dtype`, biases f32, and the last layer
    stored as an f32 (1, n_units) row + (1, 1) bias."""
    assert len(params) >= 2, "expects at least 2 layers (first + sigmoid last)"
    *hidden, (w_last, b_last) = params
    hidden_prep = tuple(
        (w.astype(compute_dtype), b.astype(jnp.float32)) for w, b in hidden
    )
    w_last_row = w_last.astype(jnp.float32).reshape(1, -1)  # (1, n_units)
    b_last = b_last.astype(jnp.float32).reshape(1, 1)
    return hidden_prep, (w_last_row, b_last)


@functools.partial(jax.jit, static_argnames=("tile_b",))
def mlp_forward(x, prepared, *, tile_b=None):
    """x: [B, feat_in] f32.  prepared: output of prepare_params().  -> [B, 1] f32."""
    hidden, (w_last, b_last) = prepared
    n_hidden = len(hidden)
    B, feat_in = x.shape

    if tile_b is None:
        tile_b = _choose_tile_b(B)
    B_pad = _round_up(B, tile_b)
    if B_pad != B:
        x = jnp.pad(x, ((0, B_pad - B), (0, 0)))
    num_tiles = B_pad // tile_b

    resident = lambda i: (0, 0)  # weights/biases: same (whole) block every step

    flat_args = [x]  # f32; cast to the MXU operand dtype happens in-kernel
    in_specs = [pl.BlockSpec((tile_b, feat_in), lambda i: (i, 0))]

    flops = 0
    for w, b in hidden:
        fan_in, fan_out = w.shape
        flops += 2 * B_pad * fan_in * fan_out
        flat_args += [w, b]
        in_specs += [
            pl.BlockSpec((fan_in, fan_out), resident),
            pl.BlockSpec((1, fan_out), resident),
        ]

    n_units = w_last.shape[1]
    flops += 2 * B_pad * n_units
    flat_args += [w_last, b_last]
    in_specs += [
        pl.BlockSpec((1, n_units), resident),
        pl.BlockSpec((1, 1), resident),
    ]

    bytes_accessed = sum(a.size * a.dtype.itemsize for a in flat_args)
    bytes_accessed += B_pad * 4  # packed scalar-per-row output writeback

    out = pl.pallas_call(
        _make_mlp_kernel(n_hidden),
        out_shape=jax.ShapeDtypeStruct((num_tiles, 1, tile_b), jnp.float32),
        grid=(num_tiles,),
        in_specs=in_specs,
        # Packed, lane-dense output row per grid step (last two block dims equal
        # the full array dims, so the (8,128) constraint is satisfied).
        out_specs=pl.BlockSpec((None, 1, tile_b), lambda i: (i, 0, 0)),
        compiler_params=pltpu.CompilerParams(
            dimension_semantics=("parallel",),
        ),
        cost_estimate=pl.CostEstimate(
            flops=flops,
            transcendentals=B_pad,  # one sigmoid per (padded) row
            bytes_accessed=bytes_accessed,
        ),
    )(*flat_args)

    # (num_tiles, 1, tile_b) -> (B_pad, 1) -> strip batch padding.
    return out.reshape(B_pad, 1)[:B]


def init_params(key, feat_in, n_layers, n_units):
    """PyTorch Linear default init: U(-1/sqrt(fan_in), 1/sqrt(fan_in)).
    Weights stored transposed as [in, out]; biases as [1, out]."""
    ks = jax.random.split(key, 2 * n_layers)

    def lin(kw, kb, fan_in, fan_out):
        bound = 1.0 / jnp.sqrt(fan_in)
        w = jax.random.uniform(kw, (fan_in, fan_out), jnp.float32, -bound, bound)
        b = jax.random.uniform(kb, (1, fan_out), jnp.float32, -bound, bound)
        return w, b

    params = []
    for i in range(n_layers):
        if i == 0:
            fi, fo = feat_in, n_units
        elif i == n_layers - 1:
            fi, fo = n_units, 1
        else:
            fi, fo = n_units, n_units
        params.append(lin(ks[2 * i], ks[2 * i + 1], fi, fo))
    return tuple(params)


def mlp_reference(x, params):
    n_layers = len(params)
    h = x
    for i, (w, b) in enumerate(params):
        h = h @ w + b
        if i == n_layers - 1:
            h = jax.nn.sigmoid(h)
        elif i > 0:
            h = jnp.maximum(h, 0.0)
    return h


if __name__ == "__main__":
    # Net(feat_in=16, n_layers=3, n_units=32, prob_drop=0.1) in eval mode.
    feat_in, n_layers, n_units = 16, 3, 32
    B = 16

    key = jax.random.PRNGKey(0)
    kx, kp, kx2 = jax.random.split(key, 3)
    x = jax.random.normal(kx, (B, feat_in), jnp.float32)
    params = init_params(kp, feat_in, n_layers, n_units)
    ref = mlp_reference(x, params)

    # One-time weight preparation (outside the per-call path).
    prep_f32 = prepare_params(params, jnp.float32)
    prep_bf16 = prepare_params(params, jnp.bfloat16)

    # f32 MXU operand path (bit-accurate vs reference).
    out_f32 = jax.block_until_ready(mlp_forward(x, prep_f32))
    assert out_f32.shape == (B, 1)
    assert jnp.allclose(out_f32, ref, atol=1e-5, rtol=1e-5)

    # bf16 MXU operand path (valid on v5e/v6e/v7x), f32 accumulation/epilogue.
    out_bf16 = jax.block_until_ready(mlp_forward(x, prep_bf16))
    assert out_bf16.shape == (B, 1)
    assert jnp.allclose(out_bf16, ref, atol=2e-2, rtol=2e-2)

    # Non-multiple-of-tile batch: exercises batch padding + multi-step grid.
    B2 = 200
    x2 = jax.random.normal(kx2, (B2, feat_in), jnp.float32)
    ref2 = mlp_reference(x2, params)
    out2 = jax.block_until_ready(mlp_forward(x2, prep_f32))
    assert out2.shape == (B2, 1)
    assert jnp.allclose(out2, ref2, atol=1e-5, rtol=1e-5)

    print("KERNEL_OK")
</pallas_src>

<mosaic_0001>
module attributes {stable_mosaic.version = 11 : i64} {
  func.func @kernel(%arg0: i32, %arg1: memref<8x16xf32, #tpu.memory_space<vmem>>, %arg2: memref<16x32xf32, #tpu.memory_space<vmem>>, %arg3: memref<1x32xf32, #tpu.memory_space<vmem>>, %arg4: memref<32x32xf32, #tpu.memory_space<vmem>>, %arg5: memref<1x32xf32, #tpu.memory_space<vmem>>, %arg6: memref<1x32xf32, #tpu.memory_space<vmem>>, %arg7: memref<1x1xf32, #tpu.memory_space<vmem>>, %arg8: memref<1x1x8xf32, #tpu.memory_space<vmem>>) attributes {dimension_semantics = [#tpu.dimension_semantics<parallel>], iteration_bounds = array<i64: 2>, scalar_prefetch = 0 : i64, scratch_operands = 0 : i64, tpu.core_type = #tpu.core_type<tc>, window_params = [{transform_indices = @transform_0, window_bounds = array<i64: 8, 16>}, {pipeline_mode = #tpu.pipeline_mode<synchronous>, transform_indices = @transform_1, window_bounds = array<i64: 16, 32>}, {pipeline_mode = #tpu.pipeline_mode<synchronous>, transform_indices = @transform_2, window_bounds = array<i64: 1, 32>}, {pipeline_mode = #tpu.pipeline_mode<synchronous>, transform_indices = @transform_3, window_bounds = array<i64: 32, 32>}, {pipeline_mode = #tpu.pipeline_mode<synchronous>, transform_indices = @transform_4, window_bounds = array<i64: 1, 32>}, {pipeline_mode = #tpu.pipeline_mode<synchronous>, transform_indices = @transform_5, window_bounds = array<i64: 1, 32>}, {pipeline_mode = #tpu.pipeline_mode<synchronous>, transform_indices = @transform_6, window_bounds = array<i64: 1, 1>}, {transform_indices = @transform_7, window_bounds = array<i64: 1, 1, 8>}]} {
    %c0 = arith.constant 0 : index
    %c0_0 = arith.constant 0 : index
    %0 = vector.load %arg1[%c0, %c0_0] : memref<8x16xf32, #tpu.memory_space<vmem>>, vector<8x16xf32>
    %c0_1 = arith.constant 0 : index
    %c0_2 = arith.constant 0 : index
    %1 = vector.load %arg2[%c0_1, %c0_2] : memref<16x32xf32, #tpu.memory_space<vmem>>, vector<16x32xf32>
    %cst = arith.constant dense<0.000000e+00> : vector<8x32xf32>
    %2 = tpu.matmul %0, %1, %cst {dimension_numbers = #tpu.dot_dimension_numbers<[1], [0], [0], [1], [0, 0, 1, 1], [], []>} : vector<8x16xf32>, vector<16x32xf32>, vector<8x32xf32> -> vector<8x32xf32>
    %c0_3 = arith.constant 0 : index
    %c0_4 = arith.constant 0 : index
    %3 = vector.load %arg3[%c0_3, %c0_4] : memref<1x32xf32, #tpu.memory_space<vmem>>, vector<1x32xf32>
    %4 = vector.broadcast %3 : vector<1x32xf32> to vector<8x32xf32>
    %5 = arith.addf %2, %4 : vector<8x32xf32>
    %c0_5 = arith.constant 0 : index
    %c0_6 = arith.constant 0 : index
    %6 = vector.load %arg4[%c0_5, %c0_6] : memref<32x32xf32, #tpu.memory_space<vmem>>, vector<32x32xf32>
    %cst_7 = arith.constant dense<0.000000e+00> : vector<8x32xf32>
    %7 = tpu.matmul %5, %6, %cst_7 {dimension_numbers = #tpu.dot_dimension_numbers<[1], [0], [0], [1], [0, 0, 1, 1], [], []>} : vector<8x32xf32>, vector<32x32xf32>, vector<8x32xf32> -> vector<8x32xf32>
    %c0_8 = arith.constant 0 : index
    %c0_9 = arith.constant 0 : index
    %8 = vector.load %arg5[%c0_8, %c0_9] : memref<1x32xf32, #tpu.memory_space<vmem>>, vector<1x32xf32>
    %9 = vector.broadcast %8 : vector<1x32xf32> to vector<8x32xf32>
    %10 = arith.addf %7, %9 : vector<8x32xf32>
    %cst_10 = arith.constant 0.000000e+00 : f32
    %11 = vector.broadcast %cst_10 : f32 to vector<8x32xf32>
    %12 = arith.maximumf %10, %11 : vector<8x32xf32>
    %c0_11 = arith.constant 0 : index
    %c0_12 = arith.constant 0 : index
    %13 = vector.load %arg6[%c0_11, %c0_12] : memref<1x32xf32, #tpu.memory_space<vmem>>, vector<1x32xf32>
    %cst_13 = arith.constant dense<0.000000e+00> : vector<1x8xf32>
    %14 = tpu.matmul %13, %12, %cst_13 {dimension_numbers = #tpu.dot_dimension_numbers<[1], [1], [0], [0], [0, 0, 1, 0], [], []>} : vector<1x32xf32>, vector<8x32xf32>, vector<1x8xf32> -> vector<1x8xf32>
    %c0_14 = arith.constant 0 : index
    %c0_15 = arith.constant 0 : index
    %15 = vector.load %arg7[%c0_14, %c0_15] : memref<1x1xf32, #tpu.memory_space<vmem>>, vector<1x1xf32>
    %16 = vector.broadcast %15 : vector<1x1xf32> to vector<1x8xf32>
    %17 = arith.addf %14, %16 : vector<1x8xf32>
    %18 = arith.negf %17 : vector<1x8xf32>
    %19 = math.exp %18 : vector<1x8xf32>
    %cst_16 = arith.constant 1.000000e+00 : f32
    %20 = vector.broadcast %cst_16 : f32 to vector<1x8xf32>
    %21 = arith.addf %20, %19 : vector<1x8xf32>
    %22 = arith.divf %20, %21 : vector<1x8xf32>
    %c0_17 = arith.constant 0 : index
    %c0_18 = arith.constant 0 : index
    %c0_19 = arith.constant 0 : index
    %23 = vector.load %arg8[%c0_17, %c0_18, %c0_19] : memref<1x1x8xf32, #tpu.memory_space<vmem>>, vector<1x1x8xf32>
    %24 = vector.shape_cast %23 : vector<1x1x8xf32> to vector<1x8xf32>
    %25 = vector.shape_cast %22 : vector<1x8xf32> to vector<1x1x8xf32>
    tpu.vector_store %arg8[%c0_17, %c0_18, %c0_19], %25 {strides = array<i32>} : memref<1x1x8xf32, #tpu.memory_space<vmem>>, vector<1x1x8xf32>,
    return
  }
  func.func @transform_0(%arg0: i32) -> (i32, i32) {
    %c0_i32 = arith.constant 0 : i32
    %c0_i32_0 = arith.constant 0 : i32
    return %arg0, %c0_i32 : i32, i32
  }
  func.func @transform_1(%arg0: i32) -> (i32, i32) {
    %c0_i32 = arith.constant 0 : i32
    %c0_i32_0 = arith.constant 0 : i32
    %c0_i32_1 = arith.constant 0 : i32
    return %c0_i32, %c0_i32_0 : i32, i32
  }
  func.func @transform_2(%arg0: i32) -> (i32, i32) {
    %c0_i32 = arith.constant 0 : i32
    %c0_i32_0 = arith.constant 0 : i32
    %c0_i32_1 = arith.constant 0 : i32
    return %c0_i32, %c0_i32_0 : i32, i32
  }
  func.func @transform_3(%arg0: i32) -> (i32, i32) {
    %c0_i32 = arith.constant 0 : i32
    %c0_i32_0 = arith.constant 0 : i32
    %c0_i32_1 = arith.constant 0 : i32
    return %c0_i32, %c0_i32_0 : i32, i32
  }
  func.func @transform_4(%arg0: i32) -> (i32, i32) {
    %c0_i32 = arith.constant 0 : i32
    %c0_i32_0 = arith.constant 0 : i32
    %c0_i32_1 = arith.constant 0 : i32
    return %c0_i32, %c0_i32_0 : i32, i32
  }
  func.func @transform_5(%arg0: i32) -> (i32, i32) {
    %c0_i32 = arith.constant 0 : i32
    %c0_i32_0 = arith.constant 0 : i32
    %c0_i32_1 = arith.constant 0 : i32
    return %c0_i32, %c0_i32_0 : i32, i32
  }
  func.func @transform_6(%arg0: i32) -> (i32, i32) {
    %c0_i32 = arith.constant 0 : i32
    %c0_i32_0 = arith.constant 0 : i32
    %c0_i32_1 = arith.constant 0 : i32
    return %c0_i32, %c0_i32_0 : i32, i32
  }
  func.func @transform_7(%arg0: i32) -> (i32, i32, i32) {
    %c0_i32 = arith.constant 0 : i32
    %c0_i32_0 = arith.constant 0 : i32
    %c0_i32_1 = arith.constant 0 : i32
    return %arg0, %c0_i32, %c0_i32_0 : i32, i32, i32
  }
}

</mosaic_0001>

<bundles_post_ra>
// kernel: mlp_forward.1
= control target key start
LH: loop header
LB: loop body
LE: loop exit
PB: predicated region body
PF: predicated region fallthrough
CT: control target
= control target key end

     0   :  { %s1100_s0 = inlined_call_operand.hbm [shape: f32[16,16], index: 0, kind: input, shape index: {}]   ;;  %s1101_s1 = inlined_call_operand.hbm [shape: f32[16,32], index: 1, kind: input, shape index: {}]   ;;  %s1102_s2 = inlined_call_operand.vmem [shape: f32[1,32], index: 2, kind: input, shape index: {}]   ;;  %s1103_s3 = inlined_call_operand.hbm [shape: f32[32,32], index: 3, kind: input, shape index: {}]   ;;  %s1104_s4 = inlined_call_operand.vmem [shape: f32[1,32], index: 4, kind: input, shape index: {}]   ;;  %s1105_s5 = inlined_call_operand.vmem [shape: f32[1,32], index: 5, kind: input, shape index: {}]   ;;  %s1106_s6 = inlined_call_operand.<no memory space> [shape: f32[1,1], index: 6, kind: input, shape index: {}]   ;;  %s1107_s7 = inlined_call_operand.vmem [shape: f32[2,1,8], index: 7, kind: output, shape index: {}]  }
   0x1   :  { %v12_v0 = vstv %s1106_s6 }
   0x2   :  { %13 = vst [vmem:[#allocation2] sm:$0x1] %v12_v0 }
   0x3   :  { %14 = vsyncpa [#allocation4], 0 }
   0x4   :  { %16 = vsyncpa [#allocation4 + $0x1], 0 }
   0x5   :  { %17 = vsyncpa [#allocation6], 0  ;;  %s960_s26 = smov 0   ;;  %s962_s27 = smov 0  }
   0x6   :  { %s964_s28 = smov 0   ;;  %s966_s29 = smov 0  }
   0x7 LB: > { %s979_s6 = sadd.s32 4294967295, %s907_s29   ;;  %p43_p0 = scmp.ne.s32.totalorder %s899_s27, %s895_s26  ;;  %s907_s29 = sphi %s966_s29, %s1123_s29   ;;  %s903_s28 = sphi %s964_s28, %s1122_s28   ;;  %s899_s27 = sphi %s962_s27, %s1121_s27   ;;  %s895_s26 = sphi %s960_s26, %s1120_s26  }
   0x8   : > { %p1108_p1 = scmp.eq.s32.totalorder %s979_s6, 0  ;;  %p667_p2 = scmp.ge.s32.totalorder %s907_s29, 1 }
   0x9   : > { %p206_p3 = scmp.lt.s32.totalorder %s907_s29, 3  ;;  %s909_s9 = smov [#allocation5]  }
   0xa   : > { %p987_p4 = por %p1108_p1, %p43_p0  ;;  %s218_s10 = sshll.u32 %s909_s9, 4  ;;  %s219_s10 = int_to_ptr.vmem [resolvable:$true] %s218_s10 }
   0xb   : > { %p991_p5 = pnand %p667_p2, %p206_p3  ;;  %s910_s12 = smov [#allocation7]  }
   0xc   : > { %s1111_s30 = scalar_select %p987_p4, 1, 0 }
   0xd   : > { %s1112_s8 = scalar_select %p991_p5, 1, 0 }
   0xe   : > { %p729_p6 = pneg %p991_p5  ;;  %s234_s13 = sshll.u32 %s910_s12, 4  ;;  %s235_s13 = int_to_ptr.vmem [resolvable:$true] %s234_s13 }
   0xf   : > { %s800_s14 = scalar_lea.vmem %s219_s10, 256  ;;  %p808_p12 = scmp.lt.s32.totalorder %s219_s10, %s219_s10 }
  0x10   : > { %p999_p7 = pnand %p729_p6, %p1108_p1  ;;  %p801_p9 = scmp.ne.s32.totalorder %s219_s10, %s800_s14 }
  0x11   : > { %p809_p13 = scmp.lt.s32.totalorder %s800_s14, %s800_s14 }
  0x12   : > { %p791_p8 = pneg %p999_p7 }
  0x13   : > { %p810_p0 = por %p809_p13, %p808_p12 }
  0x14   : > { %p803_p10 = pnand %p801_p9, %p791_p8 }
  0x16   : > { %p804_p11 = pneg %p803_p10 }
  0x18   : > { %p811_p2 = pnand %p810_p0, %p804_p11 }
  0x1a   : > { %814 = shalt.err (!%p811_p2)
}
  0x1b   : > { %s911_s15 = smov 128   ;;  %s912_s16 = smov 8  }
  0x1c   : > { %732 = dma.hbm_to_vmem [thread:$0]  (!%p999_p7), %s1101_s1, 256, %s219_s10, [#allocation6], %s911_s15, %s911_s15, %s912_s16  }
  0x1d   : > { %s826_s19 = scalar_lea.vmem %s235_s13, 512  ;;  %p834_p10 = scmp.lt.s32.totalorder %s235_s13, %s235_s13 }
  0x1e   : > { %p827_p3 = scmp.ne.s32.totalorder %s235_s13, %s826_s19  ;;  %p835_p1 = scmp.lt.s32.totalorder %s826_s19, %s826_s19 }
  0x20   : > { %p829_p6 = pnand %p827_p3, %p791_p8  ;;  %p836_p12 = por %p835_p1, %p834_p10 }
  0x22   : > { %p830_p9 = pneg %p829_p6 }
  0x24   : > { %p837_p11 = pnand %p836_p12, %p830_p9 }
  0x26   : > { %840 = shalt.err (!%p837_p11)
}
  0x27   : > { %735 = dma.hbm_to_vmem [thread:$0]  (!%p999_p7), %s1103_s3, 512, %s235_s13, [#allocation6], %s911_s15, %s911_s15, %s912_s16  }
  0x28   : > { %s1022_s22 = sadd.s32 1, %s907_s29   ;;  %s30_s23 = sadd.s32 1, %s903_s28 }
  0x29   : > { %s27_s24 = ssub.s32 %s907_s29, %s1022_s22  ;;  %p37_p1 = scmp.ne.s32.totalorder %s903_s28, %s899_s27 }
  0x2a   : > { %p28_p8 = scmp.eq.s32.totalorder %s27_s24, 0  ;;  %p38_p13 = scmp.eq.s32.totalorder %s907_s29, 0 }
  0x2b   : > { %p742_p0 = scmp.lt.s32.totalorder %s907_s29, 2  ;;  %s257_s25 = sand.u32 1, %s903_s28  }
  0x2c   : > { %s1033_s26 = scalar_select %p28_p8, %s903_s28, %s30_s23  }
  0x2d   : > { %p39_p2 = por %p38_p13, %p37_p1  ;;  %s671_s9 = sshll.u32 %s257_s25, 3 }
  0x2e   : > { %s672_s10 = sshll.u32 %s907_s29, 7  ;;  %s261_s13 = scalar_lea.vmem [#allocation3], %s671_s9 }
  0x2f   : > { %s1039_s14 = scalar_lea.hbm %s1100_s0, %s672_s10  ;;  %s268_s15 = sshll.u32 %s261_s13, 4  ;;  %s269_s15 = int_to_ptr.vmem [resolvable:$true] %s268_s15 }
  0x30   : > { %p1041_p7 = pnand %p742_p0, %p39_p2  ;;  %s258_s17 = scalar_lea.sflag [#allocation4], %s257_s25 }
  0x31   : > { %s841_s18 = scalar_lea.hbm %s1039_s14, 128  ;;  %s846_s20 = scalar_lea.hbm %s1100_s0, 256 }
  0x32   : > { %p842_p3 = scmp.ne.s32.totalorder %s1039_s14, %s841_s18  ;;  %p843_p6 = pneg %p1041_p7 }
  0x33   : > { %p847_p12 = scmp.lt.s32.totalorder %s1039_s14, %s1100_s0  ;;  %p848_p11 = scmp.lt.s32.totalorder %s846_s20, %s841_s18 }
  0x34   : > { %p844_p9 = pnand %p843_p6, %p842_p3 }
  0x35   : > { %p849_p1 = por %p848_p11, %p847_p12 }
  0x36   : > { %p845_p10 = pneg %p844_p9 }
  0x38   : > { %p850_p8 = pnand %p849_p1, %p845_p10 }
  0x3a   : > { %853 = shalt.err (!%p850_p8)
}
  0x3b   : > { %s854_s24 = scalar_lea.vmem %s269_s15, 128  ;;  %s913_s25 = smov [#allocation3]  }
  0x3c   : > { %p855_p13 = scmp.ne.s32.totalorder %s269_s15, %s854_s24  ;;  %s859_s9 = sshll.u32 %s913_s25, 4  ;;  %s860_s9 = int_to_ptr.vmem [resolvable:$false] %s859_s9 }
  0x3d   : > { %s861_s10 = scalar_lea.vmem %s860_s9, 256  ;;  %p862_p3 = scmp.lt.s32.totalorder %s269_s15, %s860_s9 }
  0x3e   : > { %p857_p0 = pnand %p855_p13, %p843_p6  ;;  %p863_p9 = scmp.lt.s32.totalorder %s861_s10, %s854_s24 }
  0x40   : > { %p858_p2 = pneg %p857_p0  ;;  %p864_p4 = por %p863_p9, %p862_p3 }
  0x42   : > { %p865_p5 = pnand %p864_p4, %p858_p2 }
  0x44   : > { %868 = shalt.err (!%p865_p5)
}
  0x45   : > { %739 = dma.hbm_to_vmem [thread:$0]  (!%p1041_p7), %s1039_s14, 128, %s269_s15, %s258_s17  }
  0x46   : > { %p1115_p10 = scmp.ne.s32.totalorder %s1112_s8, 0 }
  0x47   : > { %s279_s11 = sand.u32 (!%p1115_p10), 1, %s899_s27   ;;  %p1116_p6 = scmp.ne.s32.totalorder (!%p1115_p10), %s1111_s30, 0 }
  0x48   : > { %277 = sbr.rel (%p1115_p10) target bundleno = 710 (0x2c6), region = 48  ;;  %s674_s12 = sshll.u32 (!%p1115_p10), %s279_s11, 3 }
  0x49   : > { %s280_s13 = scalar_lea.sflag (!%p1115_p10), [#allocation4], %s279_s11  ;;  %s283_s18 = scalar_lea.vmem (!%p1115_p10), [#allocation3], %s674_s12 }
  0x4d   : > { %886 = dma.done.wait (%p1116_p6), %s280_s13, 128  }
  0x4e   : > { %888 = vsyncadd (%p1116_p6), %s280_s13, 4294967168  ;;  %p1117_p4 = scmp.eq.s32.totalorder %s979_s6, 0 }
  0x50   : > { %890 = dma.done.wait (%p1117_p4), [#allocation6], 768   ;;  %p1118_p5 = pmov %p1117_p4 }
  0x51   : > { %v914_v1 = vmov 0.0   ;;  %vm915_vm0 = vmmov 0   ;;  %v325_v2 = vld [vmem:[#allocation5 + $0x8] sm:$0xff]  ;;  %v324_v3 = vld [vmem:[#allocation5] sm:$0xff]  ;;  %v323_v4 = vld [vmem:[%s283_s18] sm:$0xff]  ;;  %vm333_vm1 = vcmask 130048   ;;  %v500_v21 = vlaneseq }
  0x52   : > { %892 = vsyncadd (%p1118_p5), [#allocation6], 4294966528  ;;  %696 = vmatprep.subr.mxu0 %v914_v1  ;;  %700 = vmatprep.mubr.msk.f32.mxu0 %vm915_vm0, %v914_v1  ;;  %v410_v5 = vld [vmem:[#allocation7 + $0x18] sm:$0xff]  ;;  %v409_v6 = vld [vmem:[#allocation7 + $0x10] sm:$0xff]  ;;  %vm418_vm2 = vcmask 261120   ;;  %v916_v14 = vmov 0  }
  0x53   : > { %703 = vmatprep.subr.mxu1 %v914_v1  ;;  %711 = vmatprep.mubr.msk.f32.mxu1 %vm915_vm0, %v914_v1  ;;  %v408_v7 = vld [vmem:[#allocation7 + $0x8] sm:$0xff]  ;;  %v407_v8 = vld [vmem:[#allocation7] sm:$0xff]  ;;  %v677_v9 = vld [vmem:[%s1102_s2] ss:$0 sm:$0xff]  ;;  %v501_v22 = vshrl.u32 %v500_v21, 7  ;;  %p320_p7 = scmp.lt.s32.totalorder %s979_s6, 1 }
  0x54   : > { %697 = vmatpush3.msra.mxu0 %v325_v2  ;;  %704 = vmatpush3.msra.mxu1 %v410_v5  ;;  %v494_v13 = vld [vmem:[#allocation2] sm:$0x1]  ;;  %vm586_vm3 = vcmask 57344  }
  0x55   : > { %698 = vmatprep.subr.mxu0 %v914_v1  ;;  %705 = vmatprep.subr.mxu1 %v914_v1  ;;  %v679_v15 = vld [vmem:[%s1104_s4] ss:$0 sm:$0xff]  ;;  %v502_v23 = vsub.s32 0, %v501_v22  ;;  %s1125_s6 = smov (!%p320_p7, %s979_s6), 1 }
  0x56   : > { %699 = vmatpush3.msra.mxu0 %v324_v3  ;;  %706 = vmatpush3.msra.mxu1 %v409_v6  ;;  %v493_v20 = vld [vmem:[%s1105_s5] sm:$0x1]  ;;  %s322_s20 = scalar_lea.vmem %s1107_s7, %s1125_s6 }
  0x57   : > { %701 = vmatmul.mubr.msk.f32.vlgmr.msra.gmra.mxu0 %vm333_vm1, %v323_v4  ;;  %707 = vmatprep.subr.mxu1 %v914_v1 }
  0x58   : > { %714 = vmatprep.subr.mxu0 %v914_v1  ;;  %716 = vmatprep.mubr.msk.f32.mxu0 %vm915_vm0, %v914_v1 }
  0x59   : > { %708 = vmatpush3.msra.mxu1 %v408_v7  ;;  %784 = vset.pattern.permute.xlu0 %v916_v14 }
  0x5a   : > { %709 = vmatprep.subr.mxu1 %v914_v1  ;;  %497 = vperm.xlu0 %784, %v494_v13  }
  0x5b   : > { %710 = vmatpush3.msra.mxu1 %v407_v8 }
  0xd5   : > { %v498_v24 = vpop.permute.xlu0 %497 }
  0xd6   : > { %v503_v25 = vrot.slane %v498_v24, %v502_v23 }
 0x117   : > { %v403_v10 = vpop.f32.mrf.mxu0 }
 0x118   : > { %v404_v11 = vadd.f32 %v677_v9, %v403_v10 }
 0x119   : > { %v702_v12 = vpop.f32.mrf.mxu0 }
 0x11a   : > { %712 = vmatmul.mubr.msk.f32.vlgmr.msra.gmra.mxu1 %vm418_vm2, %v404_v11 }
 0x1da   : > { %v488_v16 = vpop.f32.mrf.mxu1 }
 0x1db   : > { %v489_v17 = vadd.f32 %v679_v15, %v488_v16 }
 0x1dc   : > { %v713_v18 = vpop.f32.mrf.mxu1 }
 0x1dd   : > { %v492_v19 = vmax.f32 %v489_v17, 0.0 }
 0x1df   : > { %715 = vmatpush3.xpose.msk.msra.mxu0 %vm418_vm2, %v492_v19 }
 0x1e2   : > { %717 = vmatmul.mubr.msk.f32.vlgmr.msra.gmra.mxu0 %vm418_vm2, %v493_v20 }
 0x2a2   : > { %v576_v26 = vpop.f32.mrf.mxu0 }
 0x2a3   : > { %v577_v27 = vadd.f32 %v576_v26, %v503_v25 }
 0x2a4   : > { %v718_v28 = vpop.f32.mrf.mxu0 }
 0x2a5   : > { %v683_v29 = vmul.f32 -1.442695, %v577_v27 }
 0x2a7   : > { %785 = vpow2.f32 %v683_v29 }
 0x2b4   : > { %v786_v30 = vpop.eup %785 }
 0x2b5   : > { %v583_v31 = vadd.f32 1.0, %v786_v30 }
 0x2b7   : > { %787 = vrcp.f32 %v583_v31 }
 0x2c4   : > { %v788_v32 = vpop.eup %787 }
 0x2c5   : > { %587 = vst.msk [vmem:[%s322_s20] sm:$0x1] %vm586_vm3, %v788_v32 }
 0x2c6 PF: > { %s1119_s21 = smov %s1033_s26  ;;  %p20_p12 = scmp.ge.s32.totalorder %s1022_s22, 4  }
 0x2c7   : > { %s1120_s26 = smov %s899_s27  ;;  %s1121_s27 = smov %s903_s28 }
 0x2c8   : > { %s1122_s28 = smov %s1119_s21  ;;  %s1123_s29 = smov %s1022_s22 }
 0x2c9   :  { %22 = sbr.rel (!%p20_p12) target bundleno = 7 (0x7), region = 96 }
 0x2ce   :  { %605 = vsyncpa [#allocation4], 1 }
 0x2cf   :  { %607 = vsyncpa [#allocation4 + $0x1], 1 }
 0x2d0   :  { %608 = vsyncpa [#allocation6], 1 }

</bundles_post_ra>
